<compile_context>
chip_gen: v6e
topology: v6e:2x2x1
jax: 0.10.0
libtpu: 0.0.40
codegen_flags: <defaults>
</compile_context>

<pallas_src>
import math
from functools import partial

import numpy as np
import jax
import jax.numpy as jnp
from jax.experimental import pallas as pl
from jax.experimental.pallas import tpu as pltpu


# ----------------------------------------------------------------------------------
# Exact GELU (PyTorch nn.GELU() default) from primitives that always lower in Mosaic:
# erf via Abramowitz & Stegun 7.1.26 (|error| <= 1.5e-7), i.e. exp/abs/where/FMA only.
# ----------------------------------------------------------------------------------
_SQRT_HALF = 0.7071067811865476


def _erf(x):
    a1, a2, a3, a4, a5 = (0.254829592, -0.284496736, 1.421413741,
                          -1.453152027, 1.061405429)
    p = 0.3275911
    sgn = jnp.where(x < 0.0, -1.0, 1.0)
    ax = jnp.abs(x)
    t = 1.0 / (1.0 + p * ax)
    poly = ((((a5 * t + a4) * t + a3) * t + a2) * t + a1) * t
    return sgn * (1.0 - poly * jnp.exp(-ax * ax))


def _gelu_exact(x):
    return 0.5 * x * (1.0 + _erf(x * _SQRT_HALF))


# ----------------------------------------------------------------------------------
# Row-roll helper.  A tiny one-off probe detects whether the XLU rotate (pltpu.roll)
# is available and which direction convention it uses; otherwise a portable
# slice+concat roll is used.  Result is cached for the process.
# ----------------------------------------------------------------------------------
_ROW_ROLL_MODE = None


def _row_roll_mode():
    global _ROW_ROLL_MODE
    if _ROW_ROLL_MODE is not None:
        return _ROW_ROLL_MODE

    def probe(x_ref, o_ref):
        o_ref[...] = pltpu.roll(x_ref[...], shift=1, axis=0)

    x = jnp.arange(8 * 128, dtype=jnp.float32).reshape(8, 128)
    try:
        out = np.asarray(
            pl.pallas_call(probe,
                           out_shape=jax.ShapeDtypeStruct((8, 128), jnp.float32))(x))
        xh = np.asarray(x)
        if np.array_equal(out, np.roll(xh, 1, axis=0)):
            _ROW_ROLL_MODE = "xlu_jnp"        # pltpu.roll matches jnp.roll
        elif np.array_equal(out, np.roll(xh, -1, axis=0)):
            _ROW_ROLL_MODE = "xlu_flipped"    # opposite sign convention
        else:
            _ROW_ROLL_MODE = "concat"
    except Exception:
        _ROW_ROLL_MODE = "concat"
    return _ROW_ROLL_MODE


def _roll_rows(y, off, mode):
    """out[j, :] = y[(j + off) % L, :]  == torch.roll(y, shifts=-off, dims=0)."""
    L = y.shape[0]
    off = off % L
    if off == 0:
        return y
    if mode == "xlu_jnp":
        return pltpu.roll(y, shift=L - off, axis=0)
    if mode == "xlu_flipped":
        return pltpu.roll(y, shift=off, axis=0)
    # Portable fallback: two static slices + one sublane concatenate.
    return jnp.concatenate([y[off:, :], y[:off, :]], axis=0)


# ----------------------------------- Kernel ----------------------------------------
def _swandna_fused_kernel(x_ref, vec_ref, w1_ref, b1_ref, w2_ref, o_ref, *,
                          group_size, offsets, roll_mode, gelu_approximate):
    """One SwanDNA block per grid step; grid = (batch, n_layers).

    The output block index is constant along the layer axis, so o_ref is the resident
    (1, L, E) activation: initialized from x_ref at layer 0, updated in place every
    layer, written back to HBM once per batch element.
    """
    layer = pl.program_id(1)

    @pl.when(layer == 0)
    def _init():
        o_ref[...] = x_ref[...]

    x = o_ref[0].astype(jnp.float32)               # (L, E): activation == residual
    L, E = x.shape

    vecs = vec_ref[0].astype(jnp.float32)          # (3, E): LN gamma / LN beta / fc2 b
    gamma, beta, b2 = vecs[0:1, :], vecs[1:2, :], vecs[2:3, :]

    # --- LayerNorm over E (eps=1e-5): single-pass stats so the two cross-lane
    #     reductions are independent (no mean->var serial chain). ---
    inv_e = 1.0 / E
    mean = jnp.sum(x, axis=-1, keepdims=True) * inv_e
    mean_sq = jnp.sum(x * x, axis=-1, keepdims=True) * inv_e
    var = mean_sq - mean * mean
    xn = (x - mean) * jax.lax.rsqrt(var + 1e-5)
    xn = xn * gamma + beta

    # --- Mlp: fc1 -> GELU -> fc2.  bf16 MXU operands, f32 accumulation. ---
    h = jnp.dot(xn.astype(jnp.bfloat16), w1_ref[0],
                preferred_element_type=jnp.float32) + b1_ref[0]
    if gelu_approximate:
        h = jax.nn.gelu(h, approximate=True)       # tanh form -> EUP (optional)
    else:
        h = _gelu_exact(h)                         # matches nn.GELU() (exact erf)
    y = jnp.dot(h.astype(jnp.bfloat16), w2_ref[0],
                preferred_element_type=jnp.float32) + b2

    # --- CircularShift + residual, fully vectorized: roll the FULL-width slab once
    #     per distinct offset, lane-select it into the groups using that offset, add
    #     the residual from registers, finish with ONE lane-dense full-width store. ---
    n_groups = E // group_size
    lane = jax.lax.broadcasted_iota(jnp.int32, (L, E), dimension=1)
    shifted = y
    rolled_cache = {}
    for i in range(1, n_groups):
        off = offsets[i] % L
        if off == 0:
            continue
        if off not in rolled_cache:
            rolled_cache[off] = _roll_rows(y, off, roll_mode)
        in_group = (lane >= i * group_size) & (lane < (i + 1) * group_size)
        shifted = jnp.where(in_group, rolled_cache[off], shifted)

    o_ref[0] = (shifted + x).astype(o_ref.dtype)   # single full-width store per layer


# ----------------------------------- Wrapper ---------------------------------------
def swandna_network(x, params, group_size, *, gelu_approximate=False,
                    vmem_limit_bytes=None):
    """SwanDNANetwork forward: every SwanDNABlock of every encoder fused in one call.

    x: (B, L, E) float32.
    params: per-layer parameters stacked over the total number of blocks
        (nl = block_num * ceil(log2(max_len))):
        gamma, beta, b2: (nl, E)   w1: (nl, E, H)   b1: (nl, H)   w2: (nl, H, E)
    """
    B, L, E = x.shape
    n_layers, _, H = params["w1"].shape
    assert E % group_size == 0, "embedding_size must be divisible by group_size"

    # MXU-friendly zero-padding of the hidden dim (math-exact).  E is NOT padded: it
    # is the LayerNorm / CircularShift axis and the (L, E) block already uses the
    # full array dims.
    Hp = ((H + 127) // 128) * 128
    w1 = params["w1"].astype(jnp.bfloat16)
    w2 = params["w2"].astype(jnp.bfloat16)
    b1 = params["b1"]
    if Hp != H:
        w1 = jnp.pad(w1, ((0, 0), (0, 0), (0, Hp - H)))
        b1 = jnp.pad(b1, ((0, 0), (0, Hp - H)))
        w2 = jnp.pad(w2, ((0, 0), (0, Hp - H), (0, 0)))
    b1 = b1.reshape(n_layers, 1, Hp)

    # Pack LN gamma / LN beta / fc2 bias into one (nl, 3, E) tile: one per-layer DMA
    # instead of three.
    vecs = jnp.stack([params["gamma"], params["beta"], params["b2"]], axis=1)

    # torch.roll offsets per group: group i is rolled by -2**(i-1) along the sequence.
    offsets = tuple(0 if i == 0 else 2 ** (i - 1) for i in range(E // group_size))

    roll_mode = _row_roll_mode()

    kernel = partial(_swandna_fused_kernel, group_size=group_size, offsets=offsets,
                     roll_mode=roll_mode, gelu_approximate=gelu_approximate)

    return pl.pallas_call(
        kernel,
        out_shape=jax.ShapeDtypeStruct((B, L, E), x.dtype),
        grid=(B, n_layers),
        in_specs=[
            pl.BlockSpec((1, L, E), lambda b, l: (b, 0, 0)),    # x (read at layer 0)
            pl.BlockSpec((1, 3, E), lambda b, l: (l, 0, 0)),    # gamma / beta / b2
            pl.BlockSpec((1, E, Hp), lambda b, l: (l, 0, 0)),   # fc1 weight (bf16)
            pl.BlockSpec((1, 1, Hp), lambda b, l: (l, 0, 0)),   # fc1 bias
            pl.BlockSpec((1, Hp, E), lambda b, l: (l, 0, 0)),   # fc2 weight (bf16)
        ],
        # Output block index depends only on the batch axis -> the activation stays
        # resident in VMEM across the whole layer stack (one writeback per element).
        out_specs=pl.BlockSpec((1, L, E), lambda b, l: (b, 0, 0)),
        # x is consumed only at layer 0 and then overwritten by the result -> share
        # the HBM buffer with the output (no second (B, L, E) HBM allocation).
        input_output_aliases={0: 0},
        compiler_params=pltpu.CompilerParams(
            dimension_semantics=("parallel", "arbitrary"),
            vmem_limit_bytes=vmem_limit_bytes),
    )(x, vecs, w1, b1, w2)


# --------------------------- Parameter construction --------------------------------
def init_params(key, n_layers, embedding_size, hidden_size):
    """Deterministic init mirroring nn.Linear defaults (uniform +-1/sqrt(fan_in)),
    stacked across all blocks of all encoders."""
    k1, k2, k3, k4 = jax.random.split(key, 4)
    bound1 = 1.0 / math.sqrt(embedding_size)
    bound2 = 1.0 / math.sqrt(hidden_size)
    return dict(
        gamma=jnp.ones((n_layers, embedding_size), jnp.float32),
        beta=jnp.zeros((n_layers, embedding_size), jnp.float32),
        w1=jax.random.uniform(k1, (n_layers, embedding_size, hidden_size),
                              jnp.float32, -bound1, bound1),
        b1=jax.random.uniform(k2, (n_layers, hidden_size), jnp.float32,
                              -bound1, bound1),
        w2=jax.random.uniform(k3, (n_layers, hidden_size, embedding_size),
                              jnp.float32, -bound2, bound2),
        b2=jax.random.uniform(k4, (n_layers, embedding_size), jnp.float32,
                              -bound2, bound2),
    )


# ------------------------------ Pure-JAX reference ----------------------------------
def _ref_network(x, params, group_size):
    """Reference forward.  Uses the same bf16 MXU-operand casts as the kernel so the
    comparison isolates kernel structure (LN / GELU / shift / residual / stacking)."""
    n_layers = params["w1"].shape[0]
    for l in range(n_layers):
        res = x
        mean = jnp.mean(x, axis=-1, keepdims=True)
        var = jnp.mean((x - mean) ** 2, axis=-1, keepdims=True)
        xn = (x - mean) * jax.lax.rsqrt(var + 1e-5)
        xn = xn * params["gamma"][l] + params["beta"][l]
        w1 = params["w1"][l].astype(jnp.bfloat16)
        w2 = params["w2"][l].astype(jnp.bfloat16)
        h = jnp.dot(xn.astype(jnp.bfloat16), w1,
                    preferred_element_type=jnp.float32) + params["b1"][l]
        h = jax.nn.gelu(h, approximate=False)
        y = jnp.dot(h.astype(jnp.bfloat16), w2,
                    preferred_element_type=jnp.float32) + params["b2"][l]
        E = y.shape[-1]
        n_groups = E // group_size
        pieces = [y[..., :group_size]]
        for i in range(1, n_groups):
            g = y[..., i * group_size:(i + 1) * group_size]
            pieces.append(jnp.roll(g, shift=-(2 ** (i - 1)), axis=1))
        x = jnp.concatenate(pieces, axis=-1) + res
    return x


# -------------------------------------- Main ----------------------------------------
if __name__ == "__main__":
    # Small config consistent with the module's constructor.
    B = 2             # batch
    max_len = 16      # sequence length L (= max_len)
    E = 32            # embedding_size
    G = 8             # group_size
    H = 64            # hidden_size
    block_num = 2
    n_layers_per_enc = math.ceil(np.log2(max_len))           # 4 blocks per encoder
    n_layers = block_num * n_layers_per_enc                  # 8 blocks total

    key = jax.random.PRNGKey(0)
    key, kx = jax.random.split(key)
    x = jax.random.normal(kx, (B, max_len, E), jnp.float32)
    params = init_params(key, n_layers, E, H)

    # Reference computed before the kernel call (the kernel aliases x's HBM buffer).
    ref = _ref_network(x, params, G)

    out = jax.block_until_ready(swandna_network(x, params, G))

    np.testing.assert_allclose(np.asarray(out), np.asarray(ref),
                               atol=2e-3, rtol=2e-3)
    print("KERNEL_OK")
</pallas_src>

<mosaic_0001>
module attributes {stable_mosaic.version = 11 : i64} {
  func.func @probe(%arg0: memref<8x128xf32, #tpu.memory_space<vmem>>, %arg1: memref<8x128xf32, #tpu.memory_space<vmem>>) attributes {dimension_semantics = [], scalar_prefetch = 0 : i64, scratch_operands = 0 : i64, tpu.core_type = #tpu.core_type<tc>} {
    %c0 = arith.constant 0 : index
    %c0_0 = arith.constant 0 : index
    %0 = vector.load %arg0[%c0, %c0_0] : memref<8x128xf32, #tpu.memory_space<vmem>>, vector<8x128xf32>
    %c1_i32 = arith.constant 1 : i32
    %1 = tpu.dynamic_rotate %0 by %c1_i32 dim 0 : vector<8x128xf32>, i32 -> vector<8x128xf32>
    %c0_1 = arith.constant 0 : index
    %c0_2 = arith.constant 0 : index
    %2 = vector.load %arg1[%c0_1, %c0_2] : memref<8x128xf32, #tpu.memory_space<vmem>>, vector<8x128xf32>
    tpu.vector_store %arg1[%c0_1, %c0_2], %1 {strides = array<i32>} : memref<8x128xf32, #tpu.memory_space<vmem>>, vector<8x128xf32>,
    return
  }
}

module attributes {stable_mosaic.version = 11 : i64} {
  func.func @_swandna_fused_kernel(%arg0: i32, %arg1: i32, %arg2: memref<1x16x32xf32, #tpu.memory_space<vmem>>, %arg3: memref<1x3x32xf32, #tpu.memory_space<vmem>>, %arg4: memref<1x32x128xbf16, #tpu.memory_space<vmem>>, %arg5: memref<1x1x128xf32, #tpu.memory_space<vmem>>, %arg6: memref<1x128x32xbf16, #tpu.memory_space<vmem>>, %arg7: memref<1x16x32xf32, #tpu.memory_space<vmem>>) attributes {dimension_semantics = [#tpu.dimension_semantics<parallel>, #tpu.dimension_semantics<arbitrary>], iteration_bounds = array<i64: 2, 8>, scalar_prefetch = 0 : i64, scratch_operands = 0 : i64, tpu.core_type = #tpu.core_type<tc>, window_params = [{transform_indices = @transform_0, window_bounds = array<i64: 1, 16, 32>}, {transform_indices = @transform_1, window_bounds = array<i64: 1, 3, 32>}, {transform_indices = @transform_2, window_bounds = array<i64: 1, 32, 128>}, {transform_indices = @transform_3, window_bounds = array<i64: 1, 1, 128>}, {transform_indices = @transform_4, window_bounds = array<i64: 1, 128, 32>}, {transform_indices = @transform_5, window_bounds = array<i64: 1, 16, 32>}]} {
    %c0_i32 = arith.constant 0 : i32
    %0 = arith.cmpi eq, %arg1, %c0_i32 : i32
    %1 = arith.extui %0 : i1 to i32
    %c0_i32_0 = arith.constant 0 : i32
    %2 = arith.cmpi ne, %1, %c0_i32_0 : i32
    scf.if %2 {
      %c0_42 = arith.constant 0 : index
      %c0_43 = arith.constant 0 : index
      %c0_44 = arith.constant 0 : index
      %119 = vector.load %arg2[%c0_42, %c0_43, %c0_44] : memref<1x16x32xf32, #tpu.memory_space<vmem>>, vector<1x16x32xf32>
      %c0_45 = arith.constant 0 : index
      %c0_46 = arith.constant 0 : index
      %c0_47 = arith.constant 0 : index
      %120 = vector.load %arg7[%c0_45, %c0_46, %c0_47] : memref<1x16x32xf32, #tpu.memory_space<vmem>>, vector<1x16x32xf32>
      tpu.vector_store %arg7[%c0_45, %c0_46, %c0_47], %119 {strides = array<i32>} : memref<1x16x32xf32, #tpu.memory_space<vmem>>, vector<1x16x32xf32>,
    } else {
    }
    %c0 = arith.constant 0 : index
    %c0_1 = arith.constant 0 : index
    %c0_2 = arith.constant 0 : index
    %3 = vector.load %arg7[%c0, %c0_1, %c0_2] : memref<1x16x32xf32, #tpu.memory_space<vmem>>, vector<1x16x32xf32>
    %4 = vector.shape_cast %3 : vector<1x16x32xf32> to vector<16x32xf32>
    %c0_3 = arith.constant 0 : index
    %c0_4 = arith.constant 0 : index
    %c0_5 = arith.constant 0 : index
    %5 = vector.load %arg3[%c0_3, %c0_4, %c0_5] : memref<1x3x32xf32, #tpu.memory_space<vmem>>, vector<1x3x32xf32>
    %6 = vector.shape_cast %5 : vector<1x3x32xf32> to vector<3x32xf32>
    %7 = vector.extract_strided_slice %6 {offsets = [0, 0], sizes = [1, 32], strides = [1, 1]} : vector<3x32xf32> to vector<1x32xf32>
    %8 = vector.extract_strided_slice %6 {offsets = [1, 0], sizes = [1, 32], strides = [1, 1]} : vector<3x32xf32> to vector<1x32xf32>
    %9 = vector.extract_strided_slice %6 {offsets = [2, 0], sizes = [1, 32], strides = [1, 1]} : vector<3x32xf32> to vector<1x32xf32>
    %cst = arith.constant dense<0.000000e+00> : vector<16xf32>
    %10 = vector.multi_reduction <add>, %4, %cst [1] : vector<16x32xf32> to vector<16xf32>
    %11 = vector.shape_cast %10 : vector<16xf32> to vector<16x1xf32>
    %cst_6 = arith.constant 3.125000e-02 : f32
    %12 = vector.broadcast %cst_6 : f32 to vector<16x1xf32>
    %13 = arith.mulf %11, %12 : vector<16x1xf32>
    %14 = arith.mulf %4, %4 : vector<16x32xf32>
    %cst_7 = arith.constant dense<0.000000e+00> : vector<16xf32>
    %15 = vector.multi_reduction <add>, %14, %cst_7 [1] : vector<16x32xf32> to vector<16xf32>
    %16 = vector.shape_cast %15 : vector<16xf32> to vector<16x1xf32>
    %cst_8 = arith.constant 3.125000e-02 : f32
    %17 = vector.broadcast %cst_8 : f32 to vector<16x1xf32>
    %18 = arith.mulf %16, %17 : vector<16x1xf32>
    %19 = arith.mulf %13, %13 : vector<16x1xf32>
    %20 = arith.subf %18, %19 : vector<16x1xf32>
    %21 = vector.broadcast %13 : vector<16x1xf32> to vector<16x32xf32>
    %22 = arith.subf %4, %21 : vector<16x32xf32>
    %cst_9 = arith.constant 9.99999974E-6 : f32
    %23 = vector.broadcast %cst_9 : f32 to vector<16x1xf32>
    %24 = arith.addf %20, %23 : vector<16x1xf32>
    %25 = math.rsqrt %24 : vector<16x1xf32>
    %26 = vector.broadcast %25 : vector<16x1xf32> to vector<16x32xf32>
    %27 = arith.mulf %22, %26 : vector<16x32xf32>
    %28 = vector.broadcast %7 : vector<1x32xf32> to vector<16x32xf32>
    %29 = arith.mulf %27, %28 : vector<16x32xf32>
    %30 = vector.broadcast %8 : vector<1x32xf32> to vector<16x32xf32>
    %31 = arith.addf %29, %30 : vector<16x32xf32>
    %32 = arith.truncf %31 : vector<16x32xf32> to vector<16x32xbf16>
    %c0_10 = arith.constant 0 : index
    %c0_11 = arith.constant 0 : index
    %c0_12 = arith.constant 0 : index
    %33 = vector.load %arg4[%c0_10, %c0_11, %c0_12] : memref<1x32x128xbf16, #tpu.memory_space<vmem>>, vector<1x32x128xbf16>
    %34 = vector.shape_cast %33 : vector<1x32x128xbf16> to vector<32x128xbf16>
    %cst_13 = arith.constant dense<0.000000e+00> : vector<16x128xf32>
    %35 = tpu.matmul %32, %34, %cst_13 {dimension_numbers = #tpu.dot_dimension_numbers<[1], [0], [0], [1], [0, 0, 1, 1], [], []>} : vector<16x32xbf16>, vector<32x128xbf16>, vector<16x128xf32> -> vector<16x128xf32>
    %c0_14 = arith.constant 0 : index
    %c0_15 = arith.constant 0 : index
    %c0_16 = arith.constant 0 : index
    %36 = vector.load %arg5[%c0_14, %c0_15, %c0_16] : memref<1x1x128xf32, #tpu.memory_space<vmem>>, vector<1x1x128xf32>
    %37 = vector.shape_cast %36 : vector<1x1x128xf32> to vector<1x128xf32>
    %38 = vector.broadcast %37 : vector<1x128xf32> to vector<16x128xf32>
    %39 = arith.addf %35, %38 : vector<16x128xf32>
    %cst_17 = arith.constant 5.000000e-01 : f32
    %40 = vector.broadcast %cst_17 : f32 to vector<16x128xf32>
    %41 = arith.mulf %40, %39 : vector<16x128xf32>
    %cst_18 = arith.constant 0.707106769 : f32
    %42 = vector.broadcast %cst_18 : f32 to vector<16x128xf32>
    %43 = arith.mulf %39, %42 : vector<16x128xf32>
    %cst_19 = arith.constant 0.000000e+00 : f32
    %44 = vector.broadcast %cst_19 : f32 to vector<16x128xf32>
    %45 = arith.cmpf olt, %43, %44 : vector<16x128xf32>
    %cst_20 = arith.constant -1.000000e+00 : f32
    %cst_21 = arith.constant 1.000000e+00 : f32
    %46 = vector.broadcast %cst_20 : f32 to vector<16x128xf32>
    %47 = vector.broadcast %cst_21 : f32 to vector<16x128xf32>
    %48 = arith.select %45, %46, %47 : vector<16x128xi1>, vector<16x128xf32>
    %49 = math.absf %43 : vector<16x128xf32>
    %cst_22 = arith.constant 0.327591091 : f32
    %50 = vector.broadcast %cst_22 : f32 to vector<16x128xf32>
    %51 = arith.mulf %50, %49 : vector<16x128xf32>
    %cst_23 = arith.constant 1.000000e+00 : f32
    %52 = vector.broadcast %cst_23 : f32 to vector<16x128xf32>
    %53 = arith.addf %52, %51 : vector<16x128xf32>
    %cst_24 = arith.constant 1.000000e+00 : f32
    %54 = vector.broadcast %cst_24 : f32 to vector<16x128xf32>
    %55 = arith.divf %54, %53 : vector<16x128xf32>
    %cst_25 = arith.constant 1.06140542 : f32
    %56 = vector.broadcast %cst_25 : f32 to vector<16x128xf32>
    %57 = arith.mulf %56, %55 : vector<16x128xf32>
    %cst_26 = arith.constant -1.45315206 : f32
    %58 = vector.broadcast %cst_26 : f32 to vector<16x128xf32>
    %59 = arith.addf %57, %58 : vector<16x128xf32>
    %60 = arith.mulf %59, %55 : vector<16x128xf32>
    %cst_27 = arith.constant 1.42141378 : f32
    %61 = vector.broadcast %cst_27 : f32 to vector<16x128xf32>
    %62 = arith.addf %60, %61 : vector<16x128xf32>
    %63 = arith.mulf %62, %55 : vector<16x128xf32>
    %cst_28 = arith.constant -0.284496725 : f32
    %64 = vector.broadcast %cst_28 : f32 to vector<16x128xf32>
    %65 = arith.addf %63, %64 : vector<16x128xf32>
    %66 = arith.mulf %65, %55 : vector<16x128xf32>
    %cst_29 = arith.constant 0.254829586 : f32
    %67 = vector.broadcast %cst_29 : f32 to vector<16x128xf32>
    %68 = arith.addf %66, %67 : vector<16x128xf32>
    %69 = arith.mulf %68, %55 : vector<16x128xf32>
    %cst_30 = arith.constant 0.000000e+00 : f32
    %70 = vector.broadcast %cst_30 : f32 to vector<16x128xf32>
    %71 = arith.subf %70, %49 : vector<16x128xf32>
    %72 = arith.mulf %71, %49 : vector<16x128xf32>
    %73 = math.exp %72 : vector<16x128xf32>
    %74 = arith.mulf %69, %73 : vector<16x128xf32>
    %cst_31 = arith.constant 1.000000e+00 : f32
    %75 = vector.broadcast %cst_31 : f32 to vector<16x128xf32>
    %76 = arith.subf %75, %74 : vector<16x128xf32>
    %77 = arith.mulf %48, %76 : vector<16x128xf32>
    %cst_32 = arith.constant 1.000000e+00 : f32
    %78 = vector.broadcast %cst_32 : f32 to vector<16x128xf32>
    %79 = arith.addf %78, %77 : vector<16x128xf32>
    %80 = arith.mulf %41, %79 : vector<16x128xf32>
    %81 = arith.truncf %80 : vector<16x128xf32> to vector<16x128xbf16>
    %c0_33 = arith.constant 0 : index
    %c0_34 = arith.constant 0 : index
    %c0_35 = arith.constant 0 : index
    %82 = vector.load %arg6[%c0_33, %c0_34, %c0_35] : memref<1x128x32xbf16, #tpu.memory_space<vmem>>, vector<1x128x32xbf16>
    %83 = vector.shape_cast %82 : vector<1x128x32xbf16> to vector<128x32xbf16>
    %cst_36 = arith.constant dense<0.000000e+00> : vector<16x32xf32>
    %84 = tpu.matmul %81, %83, %cst_36 {dimension_numbers = #tpu.dot_dimension_numbers<[1], [0], [0], [1], [0, 0, 1, 1], [], []>} : vector<16x128xbf16>, vector<128x32xbf16>, vector<16x32xf32> -> vector<16x32xf32>
    %85 = vector.broadcast %9 : vector<1x32xf32> to vector<16x32xf32>
    %86 = arith.addf %84, %85 : vector<16x32xf32>
    %87 = tpu.iota {dimensions = array<i32: 1>} : vector<16x32xi32>
    %88 = vector.extract_strided_slice %86 {offsets = [1, 0], sizes = [15, 32], strides = [1, 1]} : vector<16x32xf32> to vector<15x32xf32>
    %89 = vector.extract_strided_slice %86 {offsets = [0, 0], sizes = [1, 32], strides = [1, 1]} : vector<16x32xf32> to vector<1x32xf32>
    %90 = tpu.concatenate %88, %89 in 0 : vector<15x32xf32>, vector<1x32xf32> -> vector<16x32xf32>
    %c8_i32 = arith.constant 8 : i32
    %91 = vector.broadcast %c8_i32 : i32 to vector<16x32xi32>
    %92 = arith.cmpi sge, %87, %91 : vector<16x32xi32>
    %c16_i32 = arith.constant 16 : i32
    %93 = vector.broadcast %c16_i32 : i32 to vector<16x32xi32>
    %94 = arith.cmpi slt, %87, %93 : vector<16x32xi32>
    %95 = arith.andi %92, %94 : vector<16x32xi1>
    %96 = arith.select %95, %90, %86 : vector<16x32xi1>, vector<16x32xf32>
    %97 = vector.extract_strided_slice %86 {offsets = [2, 0], sizes = [14, 32], strides = [1, 1]} : vector<16x32xf32> to vector<14x32xf32>
    %98 = vector.extract_strided_slice %86 {offsets = [0, 0], sizes = [2, 32], strides = [1, 1]} : vector<16x32xf32> to vector<2x32xf32>
    %99 = tpu.concatenate %97, %98 in 0 : vector<14x32xf32>, vector<2x32xf32> -> vector<16x32xf32>
    %c16_i32_37 = arith.constant 16 : i32
    %100 = vector.broadcast %c16_i32_37 : i32 to vector<16x32xi32>
    %101 = arith.cmpi sge, %87, %100 : vector<16x32xi32>
    %c24_i32 = arith.constant 24 : i32
    %102 = vector.broadcast %c24_i32 : i32 to vector<16x32xi32>
    %103 = arith.cmpi slt, %87, %102 : vector<16x32xi32>
    %104 = arith.andi %101, %103 : vector<16x32xi1>
    %105 = arith.select %104, %99, %96 : vector<16x32xi1>, vector<16x32xf32>
    %106 = vector.extract_strided_slice %86 {offsets = [4, 0], sizes = [12, 32], strides = [1, 1]} : vector<16x32xf32> to vector<12x32xf32>
    %107 = vector.extract_strided_slice %86 {offsets = [0, 0], sizes = [4, 32], strides = [1, 1]} : vector<16x32xf32> to vector<4x32xf32>
    %108 = tpu.concatenate %106, %107 in 0 : vector<12x32xf32>, vector<4x32xf32> -> vector<16x32xf32>
    %c24_i32_38 = arith.constant 24 : i32
    %109 = vector.broadcast %c24_i32_38 : i32 to vector<16x32xi32>
    %110 = arith.cmpi sge, %87, %109 : vector<16x32xi32>
    %c32_i32 = arith.constant 32 : i32
    %111 = vector.broadcast %c32_i32 : i32 to vector<16x32xi32>
    %112 = arith.cmpi slt, %87, %111 : vector<16x32xi32>
    %113 = arith.andi %110, %112 : vector<16x32xi1>
    %114 = arith.select %113, %108, %105 : vector<16x32xi1>, vector<16x32xf32>
    %115 = arith.addf %114, %4 : vector<16x32xf32>
    %c0_39 = arith.constant 0 : index
    %c0_40 = arith.constant 0 : index
    %c0_41 = arith.constant 0 : index
    %116 = vector.load %arg7[%c0_39, %c0_40, %c0_41] : memref<1x16x32xf32, #tpu.memory_space<vmem>>, vector<1x16x32xf32>
    %117 = vector.shape_cast %116 : vector<1x16x32xf32> to vector<16x32xf32>
    %118 = vector.shape_cast %115 : vector<16x32xf32> to vector<1x16x32xf32>
    tpu.vector_store %arg7[%c0_39, %c0_40, %c0_41], %118 {strides = array<i32>} : memref<1x16x32xf32, #tpu.memory_space<vmem>>, vector<1x16x32xf32>,
    return
  }
  func.func @transform_0(%arg0: i32, %arg1: i32) -> (i32, i32, i32) {
    %c0_i32 = arith.constant 0 : i32
    %c0_i32_0 = arith.constant 0 : i32
    %c0_i32_1 = arith.constant 0 : i32
    return %arg0, %c0_i32, %c0_i32_0 : i32, i32, i32
  }
  func.func @transform_1(%arg0: i32, %arg1: i32) -> (i32, i32, i32) {
    %c0_i32 = arith.constant 0 : i32
    %c0_i32_0 = arith.constant 0 : i32
    %c0_i32_1 = arith.constant 0 : i32
    return %arg1, %c0_i32, %c0_i32_0 : i32, i32, i32
  }
  func.func @transform_2(%arg0: i32, %arg1: i32) -> (i32, i32, i32) {
    %c0_i32 = arith.constant 0 : i32
    %c0_i32_0 = arith.constant 0 : i32
    %c0_i32_1 = arith.constant 0 : i32
    return %arg1, %c0_i32, %c0_i32_0 : i32, i32, i32
  }
  func.func @transform_3(%arg0: i32, %arg1: i32) -> (i32, i32, i32) {
    %c0_i32 = arith.constant 0 : i32
    %c0_i32_0 = arith.constant 0 : i32
    %c0_i32_1 = arith.constant 0 : i32
    return %arg1, %c0_i32, %c0_i32_0 : i32, i32, i32
  }
  func.func @transform_4(%arg0: i32, %arg1: i32) -> (i32, i32, i32) {
    %c0_i32 = arith.constant 0 : i32
    %c0_i32_0 = arith.constant 0 : i32
    %c0_i32_1 = arith.constant 0 : i32
    return %arg1, %c0_i32, %c0_i32_0 : i32, i32, i32
  }
  func.func @transform_5(%arg0: i32, %arg1: i32) -> (i32, i32, i32) {
    %c0_i32 = arith.constant 0 : i32
    %c0_i32_0 = arith.constant 0 : i32
    %c0_i32_1 = arith.constant 0 : i32
    return %arg0, %c0_i32, %c0_i32_0 : i32, i32, i32
  }
}

</mosaic_0001>

<bundles_post_ra>
// kernel: tpu_custom_call.1
= control target key start
LH: loop header
LB: loop body
LE: loop exit
PB: predicated region body
PF: predicated region fallthrough
CT: control target
= control target key end

     0   :  { %6 = vsyncpa [#allocation3], 0  ;;  %s103_s0 = inlined_call_operand.hbm [shape: f32[8,128], index: 0, kind: input, shape index: {}]   ;;  %s104_s1 = inlined_call_operand.hbm [shape: f32[8,128], index: 1, kind: output, shape index: {}]  }
   0x1   :  { %7 = vsyncpa [#allocation4], 0  ;;  %s85_s6 = smov [#allocation2]  }
   0x2   :  { %s14_s7 = sshll.u32 %s85_s6, 4  ;;  %s15_s7 = int_to_ptr.vmem [resolvable:$true] %s14_s7 }
   0x3   :  { %s49_s8 = scalar_lea.vmem %s15_s7, 128  ;;  %p54_p1 = scmp.lt.s32.totalorder %s15_s7, %s15_s7 }
   0x4   :  { %p50_p0 = scmp.ne.s32.totalorder %s15_s7, %s49_s8  ;;  %p55_p2 = scmp.lt.s32.totalorder %s49_s8, %s49_s8 }
   0x6   :  { %p56_p3 = por %p55_p2, %p54_p1 }
   0x8   :  { %p57_p4 = pnand %p56_p3, %p50_p0 }
   0xa   :  { %60 = shalt.err (!%p57_p4)
}
   0xb   :  { %17 = dma.hbm_to_vmem [thread:$0]  %s103_s0, 128, %s15_s7, [#allocation3]  }
   0xc   :  { %81 = dma.done.wait [#allocation3], 128  }
   0xd   :  { %82 = vsyncadd [#allocation3], 4294967168  ;;  %s86_s11 = smov [#allocation5]   ;;  %v21_v0 = vld [vmem:[#allocation2] sm:$0xff] }
   0xe   :  { %s30_s12 = sshll.u32 %s86_s11, 4  ;;  %v22_v1 = vrot.slane %v21_v0, 7  ;;  %s31_s12 = int_to_ptr.vmem [resolvable:$true] %s30_s12 }
   0xf   :  { %s61_s13 = scalar_lea.vmem %s31_s12, 128  ;;  %p66_p6 = scmp.lt.s32.totalorder %s31_s12, %s31_s12 }
  0x10   :  { %23 = vst [vmem:[#allocation5] sm:$0xff] %v22_v1  ;;  %p62_p5 = scmp.ne.s32.totalorder %s31_s12, %s61_s13  ;;  %p67_p7 = scmp.lt.s32.totalorder %s61_s13, %s61_s13 }
  0x12   :  { %p68_p8 = por %p67_p7, %p66_p6 }
  0x14   :  { %p69_p9 = pnand %p68_p8, %p62_p5 }
  0x16   :  { %72 = shalt.err (!%p69_p9)
}
  0x17   :  { %33 = dma.vmem_to_hbm [thread:$0]  %s31_s12, 128, %s104_s1, [#allocation4]  }
  0x18   :  { %83 = dma.done.wait [#allocation4], 128  }
  0x19   :  { %84 = vsyncadd [#allocation4], 4294967168 }
  0x1a   :  { %37 = vsyncpa [#allocation3], 1 }
  0x1b   :  { %38 = vsyncpa [#allocation4], 1 }

// kernel: tpu_custom_call.1
= control target key start
LH: loop header
LB: loop body
LE: loop exit
PB: predicated region body
PF: predicated region fallthrough
CT: control target
= control target key end

     0   :  { %s1425_s0 = inlined_call_operand.hbm [shape: f32[2,16,32], index: 0, kind: input, shape index: {}, may-alias: {0,5}]   ;;  %s1426_s1 = inlined_call_operand.vmem [shape: f32[8,3,32], index: 1, kind: input, shape index: {}]   ;;  %s1427_s2 = inlined_call_operand.vmem [shape: bf16[8,32,128], index: 2, kind: input, shape index: {}]   ;;  %s1428_s3 = inlined_call_operand.vmem [shape: f32[8,1,128], index: 3, kind: input, shape index: {}]   ;;  %s1429_s4 = inlined_call_operand.vmem [shape: bf16[8,128,32], index: 4, kind: input, shape index: {}]   ;;  %s1430_s5 = inlined_call_operand.hbm [shape: f32[2,16,32], index: 5, kind: output, shape index: {}, may-alias: {0,5}]  }
   0x1   :  { %1436 = sst [smem:[#allocation15_spill]] %s1425_s0 }
   0x2   :  { %10 = vsyncpa [#allocation3], 0 }
   0x3   :  { %12 = vsyncpa [#allocation3 + $0x1], 0 }
   0x4   :  { %13 = vsyncpa [#allocation4], 0 }
   0x5   :  { %15 = vsyncpa [#allocation4 + $0x1], 0  ;;  %s1153_s18 = smov 0   ;;  %s1155_s19 = smov 0  }
   0x6   :  { %s1157_s20 = smov 0   ;;  %s1159_s21 = smov 0  }
   0x7   :  { %s1161_s22 = smov 0   ;;  %s1163_s23 = smov 0  }
   0x8   :  { %s1165_s24 = smov 0   ;;  %s1167_s25 = smov 0  }
   0x9 LB: > { %1437 = sst [smem:[#allocation8_spill]] %s1088_s19  ;;  %s804_s26 = sadd.s32 4294967295, %s1112_s25   ;;  %s1112_s25 = sphi %s1167_s25, %s21_s25   ;;  %s1108_s24 = sphi %s1165_s24, %s1458_s24   ;;  %s1104_s23 = sphi %s1163_s23, %s1457_s23   ;;  %s1100_s22 = sphi %s1161_s22, %s1456_s22   ;;  %s1096_s21 = sphi %s1159_s21, %s1455_s21   ;;  %s1092_s20 = sphi %s1157_s20, %s1454_s20   ;;  %s1088_s19 = sphi %s1155_s19, %s1453_s19   ;;  %s1084_s18 = sphi %s1153_s18, %s1452_s18  }
   0xa   : > { %1438 = sst [smem:[#allocation9_spill]] %s1092_s20  ;;  %s805_s27 = sadd.s32 4294967294, %s1112_s25  }
   0xb   : > { %1439 = sst [smem:[#allocation10_spill]] %s1104_s23  ;;  %s30_s28 = sadd.s32 1, %s1104_s23 }
   0xc   : > { %1440 = sst [smem:[#allocation11_spill]] %s1108_s24  ;;  %s33_s29 = sadd.s32 1, %s1108_s24 }
   0xd   : > { %p31_p0 = scmp.ge.s32.totalorder %s30_s28, 8  ;;  %s40_s30 = sadd.s32 1, %s1092_s20 }
   0xe   : > { %p47_p1 = scmp.ne.s32.totalorder %s1092_s20, %s1088_s19  ;;  %p48_p2 = scmp.eq.s32.totalorder %s1112_s25, 0 }
   0xf   : > { %s1460_s28 = smov (%p31_p0, %s30_s28), 0  ;;  %s1462_s29 = smov (!%p31_p0, %s33_s29), %s1108_s24 }
  0x10   : > { %1441 = sst [smem:[#allocation12_spill]] %s1460_s28  ;;  %p1204_p3 = por %p48_p2, %p47_p1 }
  0x11   : > { %p53_p4 = scmp.ne.s32.totalorder %s1088_s19, %s1084_s18  ;;  %p35_p5 = scmp.ge.s32.totalorder %s1462_s29, 2 }
  0x12   : > { %p54_p6 = scmp.eq.s32.totalorder %s804_s26, 0  ;;  %p181_p7 = scmp.eq.s32.totalorder %s804_s26, 15 }
  0x13   : > { %p187_p8 = scmp.eq.s32.totalorder %s805_s27, 15  ;;  %s1464_s29 = smov (%p35_p5, %s1462_s29), 0 }
  0x14   : > { %1443 = sst [smem:[#allocation13_spill]] %s1464_s29  ;;  %p1212_p9 = por %p54_p6, %p53_p4 }
  0x15   : > { %p1216_p10 = por %p181_p7, %p47_p1  ;;  %s37_s9 = ssub.s32 %s1108_s24, %s1464_s29 }
  0x16   : > { %p1222_p11 = por %p187_p8, %p53_p4  ;;  %p38_p12 = scmp.eq.s32.totalorder %s37_s9, 0 }
  0x17   : > { %p893_p13 = scmp.lt.s32.totalorder %s1112_s25, 16  ;;  %s207_s11 = sand.u32 1, %s1092_s20  }
  0x18   : > { %s1229_s12 = scalar_select %p38_p12, %s1092_s20, %s40_s30  }
  0x19   : > { %s808_s13 = sshll.u32 %s207_s11, 4  ;;  %s837_s14 = sshll.u32 %s1108_s24, 8 }
  0x1a   : > { %1447 = sst [smem:[#allocation14_spill]] %s1229_s12  ;;  %s211_s26 = scalar_lea.vmem [#allocation2], %s808_s13 }
  0x1b   : > { %s1448_s0 = sld [smem:[#allocation15_spill]]  ;;  %s218_s27 = sshll.u32 %s211_s26, 4  ;;  %s219_s27 = int_to_ptr.vmem [resolvable:$true] %s218_s27 }
  0x1c   : > { %p1237_p0 = pnand %p893_p13, %p1204_p3  ;;  %p811_p1 = scmp.ge.s32.totalorder %s1112_s25, 1 }
  0x1d   : > { %s208_s9 = scalar_lea.sflag [#allocation3], %s207_s11  ;;  %s1001_s30 = scalar_lea.vmem %s219_s27, 256 }
  0x1e   : > { %p990_p2 = pneg %p1237_p0  ;;  %p1002_p4 = scmp.ne.s32.totalorder %s219_s27, %s1001_s30 }
  0x1f   : > { %s1114_s28 = smov [#allocation2]  }
  0x20   : > { %p1004_p5 = pnand %p1002_p4, %p990_p2  ;;  %s1006_s15 = sshll.u32 %s1114_s28, 4  ;;  %s1007_s15 = int_to_ptr.vmem [resolvable:$false] %s1006_s15 }
  0x21   : > { %s217_s17 = scalar_lea.hbm %s1448_s0, %s837_s14  ;;  %s1008_s13 = scalar_lea.vmem %s1007_s15, 512 }
  0x22   : > { %p1005_p6 = pneg %p1004_p5  ;;  %p1009_p7 = scmp.lt.s32.totalorder %s219_s27, %s1007_s15 }
  0x23   : > { %p1010_p8 = scmp.lt.s32.totalorder %s1008_s13, %s1001_s30 }
  0x25   : > { %p1011_p12 = por %p1010_p8, %p1009_p7 }
  0x27   : > { %p1012_p3 = pnand %p1011_p12, %p1005_p6 }
  0x29   : > { %1015 = shalt.err (!%p1012_p3)
}
  0x2a   : > { %s1115_s6 = smov 128   ;;  %s1116_s11 = smov 8  }
  0x2b   : > { %888 = dma.hbm_to_vmem [thread:$0]  (!%p1237_p0), %s217_s17, 256, %s219_s27, %s208_s9, %s1115_s6, %s1115_s6, %s1116_s11  }
  0x2c   : > { %p255_p13 = scmp.lt.s32.totalorder %s1112_s25, 17 }
  0x2e   : > { %p256_p2 = pnand %p811_p1, %p255_p13 }
  0x2f   : > { %s1250_s28 = sand.u32 (!%p256_p2), 1, %s1088_s19  }
  0x30   : > { %259 = sbr.rel (%p256_p2) target bundleno = 716 (0x2cc), region = 40  ;;  %s812_s14 = sshll.u32 (!%p256_p2), %s1250_s28, 4 }
  0x31   : > { %s262_s16 = scalar_lea.sflag (!%p256_p2), [#allocation3], %s1250_s28  ;;  %s265_s26 = scalar_lea.vmem (!%p256_p2), [#allocation2], %s812_s14 }
  0x35   : > { %1075 = dma.done.wait (%p1212_p9), %s262_s16, 256  }
  0x36   : > { %1077 = vsyncadd (%p1212_p9), %s262_s16, 4294967040  ;;  %p309_p0 = scmp.lt.s32.totalorder %s1096_s21, 7  ;;  %s1284_s19 = scalar_lea.vmem [#allocation5], %s812_s14 }
  0x37   : > { %p819_p9 = scmp.ne.s32.totalorder %s1096_s21, 0 }
  0x38   : > { %s1260_s29 = scalar_select %p309_p0, %s1096_s21, 7 }
  0x39   : > { %330 = sbr.rel (%p819_p9) target bundleno = 64 (0x40), region = 48 }
  0x3a   : > { %s814_s17 = sshll.u32 %s1260_s29, 2  ;;  %s838_s27 = sshll.u32 %s1260_s29, 4 }
  0x3b   : > { %s1267_s15 = scalar_lea.vmem %s1426_s1, %s814_s17  ;;  %s1272_s7 = scalar_lea.vmem %s1427_s2, %s838_s27 }
  0x3c   : > { %s320_s0 = scalar_lea.vmem %s1428_s3, %s1260_s29  ;;  %s839_s24 = sshll.u32 %s1260_s29, 6 }
  0x3d   : > { %s1282_s20 = scalar_lea.vmem %s1429_s4, %s839_s24 }
  0x3e   : > { %v331_v0 = vld [vmem:[%s265_s26] sm:$0xff]  ;;  %vm333_vm0 = vcmask 261120   ;;  %v332_v1 = vld [vmem:[%s265_s26 + $0x8] sm:$0xff] }
  0x3f   : > { %334 = vst.msk [vmem:[%s1284_s19] sm:$0xff] %vm333_vm0, %v331_v0  ;;  %335 = vst.msk [vmem:[%s1284_s19 + $0x8] sm:$0xff] %vm333_vm0, %v332_v1 }
  0x40 PF: > { %vm339_vm1 = vcmask 261120   ;;  %v966_v10 = vld [vmem:[%s1272_s7 + $0x8] sm:$0xff]   ;;  %v1117_v11 = vmov 0.0   ;;  %vm1118_vm2 = vmmov 0   ;;  %v967_v12 = vld [vmem:[%s1272_s7] sm:$0xff]   ;;  %v370_v27 = vlaneseq  ;;  %v968_v45 = vld [vmem:[%s1282_s20 + $0x38] sm:$0xff]  }
  0x41   : > { %853 = vmatprep.subr.bf16.mxu0 %v1117_v11  ;;  %857 = vmatprep.mubr.msk.bf16.mxu0 %vm1118_vm2, %v1117_v11  ;;  %v1317_v30 = vld [vmem:[%s1267_s15] sm:$0x7]  ;;  %v969_v46 = vld [vmem:[%s1282_s20 + $0x30] sm:$0xff]   ;;  %v970_v47 = vld [vmem:[%s1282_s20 + $0x28] sm:$0xff]   ;;  %vm618_vm7 = vcmask 1046528   ;;  %vm631_vm10 = vcmask 1045504  }
  0x42   : > { %854 = vmatpush3.bf16.msra.mxu0 %v966_v10  ;;  %861 = vmatprep.subr.bf16.mxu1 %v1117_v11  ;;  %v1313_v28 = vshrl.u32 %v370_v27, 7  ;;  %v971_v48 = vld [vmem:[%s1282_s20 + $0x20] sm:$0xff]   ;;  %v972_v49 = vld [vmem:[%s1282_s20 + $0x18] sm:$0xff]   ;;  %v973_v50 = vld [vmem:[%s1282_s20 + $0x10] sm:$0xff]   ;;  %vm644_vm15 = vcmask 1043456   ;;  %s1120_s29 = smov [#allocation5]  }
  0x43   : > { %855 = vmatprep.subr.bf16.mxu0 %v1117_v11  ;;  %877 = vmatprep.mubr.msk.bf16.mxu1 %vm1118_vm2, %v1117_v11  ;;  %v974_v51 = vld [vmem:[%s1282_s20 + $0x8] sm:$0xff]   ;;  %v975_v52 = vld [vmem:[%s1282_s20] sm:$0xff]   ;;  %s675_s20 = sshll.u32 %s1284_s19, 4  ;;  %s1020_s17 = sshll.u32 %s1120_s29, 4  ;;  %s1366_s20 = int_to_ptr.vmem [resolvable:$true] %s675_s20  ;;  %s1021_s17 = int_to_ptr.vmem [resolvable:$false] %s1020_s17 }
  0x44   : > { %v372_v29 = vsub.s32 0, %v1313_v28  ;;  %v378_v35 = vsub.s32 1, %v1313_v28  ;;  %862 = vmatpush3.bf16.msra.mxu1 %v968_v45  ;;  %v820_v53 = vld [vmem:[%s320_s0] ss:$0 sm:$0xff]  ;;  %s840_s0 = sshll.u32 %s1100_s22, 8  ;;  %s662_s22 = scalar_lea.sflag [#allocation4], %s1250_s28 }
  0x45   : > { %863 = vmatprep.subr.bf16.mxu1 %v1117_v11  ;;  %s1364_s14 = scalar_lea.hbm %s1430_s5, %s840_s0  ;;  %s1016_s26 = scalar_lea.vmem %s1366_s20, 256 }
  0x46   : > { %v1290_v2 = vld [vmem:[%s1284_s19] sm:$0xff]  ;;  %v1293_v3 = vld [vmem:[%s1284_s19 + $0x8] sm:$0xff]  ;;  %856 = vmatpush3.bf16.msra.mxu0 %v967_v12  ;;  %v373_v34 = vrot.slane %v1317_v30, %v372_v29  ;;  %v379_v40 = vrot.slane %v1317_v30, %v378_v35  ;;  %p1017_p1 = scmp.ne.s32.totalorder %s1366_s20, %s1016_s26  ;;  %s1022_s27 = scalar_lea.vmem %s1021_s17, 512 }
  0x47   : > { %v340_v4 = vsel %vm339_vm1, %v1290_v2, 0.0  ;;  %v348_v5 = vmul.f32 %v1290_v2, %v1290_v2  ;;  %v343_v6 = vsel %vm339_vm1, %v1293_v3, 0.0  ;;  %v349_v7 = vmul.f32 %v1293_v3, %v1293_v3  ;;  %p1023_p6 = scmp.lt.s32.totalorder %s1366_s20, %s1021_s17  ;;  %p1024_p7 = scmp.lt.s32.totalorder %s1022_s27, %s1016_s26 }
  0x48   : > { %341 = vadd.xlane.f32.xlu0 %v340_v4  ;;  %864 = vmatpush3.bf16.msra.mxu1 %v969_v46  ;;  %p1018_p4 = pnand %p1017_p1, %p1216_p10 }
  0x49   : > { %v350_v8 = vsel %vm339_vm1, %v348_v5, 0.0  ;;  %v353_v9 = vsel %vm339_vm1, %v349_v7, 0.0  ;;  %865 = vmatprep.subr.bf16.mxu1 %v1117_v11  ;;  %p1025_p8 = por %p1024_p7, %p1023_p6 }
  0x4a   : > { %351 = vadd.xlane.f32.xlu1 %v350_v8  ;;  %p1019_p5 = pneg %p1018_p4 }
  0x4c   : > { %344 = vadd.xlane.f32.xlu0 %v343_v6  ;;  %866 = vmatpush3.bf16.msra.mxu1 %v970_v47  ;;  %p1026_p12 = pnand %p1025_p8, %p1019_p5 }
  0x4d   : > { %867 = vmatprep.subr.bf16.mxu1 %v1117_v11 }
  0x4e   : > { %354 = vadd.xlane.f32.xlu1 %v353_v9 }
  0x50   : > { %868 = vmatpush3.bf16.msra.mxu1 %v971_v48 }
  0x51   : > { %869 = vmatprep.subr.bf16.mxu1 %v1117_v11 }
  0x54   : > { %870 = vmatpush3.bf16.msra.mxu1 %v972_v49 }
  0x55   : > { %871 = vmatprep.subr.bf16.mxu1 %v1117_v11 }
  0x58   : > { %872 = vmatpush3.bf16.msra.mxu1 %v973_v50 }
  0x59   : > { %873 = vmatprep.subr.bf16.mxu1 %v1117_v11 }
  0x5c   : > { %874 = vmatpush3.bf16.msra.mxu1 %v974_v51 }
  0x5d   : > { %875 = vmatprep.subr.bf16.mxu1 %v1117_v11 }
  0x60   : > { %876 = vmatpush3.bf16.msra.mxu1 %v975_v52 }
  0xd1   : > { %v342_v13 = vpop.xlane.xlu0 %341 }
  0xd2   : > { %v346_v14 = vmul.f32 0.03125, %v342_v13 }
  0xd3   : > { %v352_v15 = vpop.xlane.xlu1 %351 }
  0xd4   : > { %v358_v16 = vmul.f32 %v346_v14, %v346_v14  ;;  %v356_v17 = vmul.f32 0.03125, %v352_v15  ;;  %v362_v31 = vsub.f32 %v1290_v2, %v346_v14 }
  0xd5   : > { %v345_v18 = vpop.xlane.xlu0 %344 }
  0xd6   : > { %v360_v19 = vsub.f32 %v356_v17, %v358_v16  ;;  %v347_v20 = vmul.f32 0.03125, %v345_v18 }
  0xd7   : > { %v355_v21 = vpop.xlane.xlu1 %354 }
  0xd8   : > { %v364_v22 = vadd.f32 1e-05, %v360_v19  ;;  %v359_v23 = vmul.f32 %v347_v20, %v347_v20  ;;  %v357_v24 = vmul.f32 0.03125, %v355_v21  ;;  %v363_v36 = vsub.f32 %v1293_v3, %v347_v20 }
  0xda   : > { %976 = vrsqrt.f32 %v364_v22  ;;  %v361_v25 = vsub.f32 %v357_v24, %v359_v23 }
  0xdc   : > { %v365_v26 = vadd.f32 1e-05, %v361_v25 }
  0xde   : > { %978 = vrsqrt.f32 %v365_v26 }
  0xe7   : > { %v977_v32 = vpop.eup %976 }
  0xe8   : > { %v368_v33 = vmul.f32 %v977_v32, %v362_v31 }
  0xea   : > { %v374_v39 = vmul.f32 %v373_v34, %v368_v33 }
  0xeb   : > { %v979_v37 = vpop.eup %978 }
  0xec   : > { %v369_v38 = vmul.f32 %v979_v37, %v363_v36  ;;  %v380_v42 = vadd.f32 %v379_v40, %v374_v39  ;;  %v1119_v39 = vmov 1.0  }
  0xee   : > { %v375_v41 = vmul.f32 %v373_v34, %v369_v38 }
  0xf0   : > { %v381_v43 = vadd.f32 %v379_v40, %v375_v41 }
  0xf2   : > { %v382_v44 = vpack.c.bf16 %v381_v43, %v380_v42 }
  0xf4   : > { %858 = vmatmul.mubr.msk.bf16.vlgmr.msra.gmra.mxu0 %vm339_vm1, %v382_v44 }
 0x1b4   : > { %v443_v54 = vpop.f32.mrf.mxu0 }
 0x1b5   : > { %v444_v55 = vadd.f32 %v820_v53, %v443_v54 }
 0x1b6   : > { %v859_v56 = vpop.f32.mrf.mxu0 }
 0x1b7   : > { %v452_v57 = vmul.f32 0.70710677, %v444_v55  ;;  %v450_v47 = vmul.f32 0.5, %v444_v55  ;;  %v615_v56 = vand.u32 127, %v370_v27 }
 0x1b8   : > { %v446_v58 = vpop.f32.mrf.mxu0 }
 0x1b9   : > { %v458_v59 = vand.u32 2147483647, %v452_v57  ;;  %v447_v60 = vadd.f32 %v820_v53, %v446_v58  ;;  %vm454_vm3 = vcmp.lt.f32.partialorder %v452_v57, 0.0  ;;  %v523_v53 = vsub.s32 2, %v1313_v28 }
 0x1ba   : > { %v860_v61 = vpop.f32.mrf.mxu0  ;;  %v456_v40 = vsel %vm454_vm3, -1.0, %v1119_v39  ;;  %vm626_vm5 = vcmp.ge.s32.totalorder %v615_v56, 8  ;;  %vm627_vm6 = vcmp.lt.s32.totalorder %v615_v56, 16  ;;  %vm639_vm8 = vcmp.ge.s32.totalorder %v615_v56, 16 }
 0x1bb   : > { %v460_v62 = vmul.f32 0.3275911, %v458_v59  ;;  %v453_v63 = vmul.f32 0.70710677, %v447_v60  ;;  %v486_v6 = vsub.f32 0.0, %v458_v59  ;;  %v451_v48 = vmul.f32 0.5, %v447_v60  ;;  %vm1348_vm13 = vmand %vm626_vm5, %vm627_vm6 }
 0x1bc   : > { %v524_v54 = vrot.slane %v1317_v30, %v523_v53  ;;  %vm640_vm9 = vcmp.lt.s32.totalorder %v615_v56, 24  ;;  %vm652_vm11 = vcmp.ge.s32.totalorder %v615_v56, 24  ;;  %vm653_vm12 = vcmp.lt.s32.totalorder %v615_v56, 32 }
 0x1bd   : > { %v462_v0 = vadd.f32 1.0, %v460_v62  ;;  %v459_v1 = vand.u32 2147483647, %v453_v63  ;;  %v488_v7 = vmul.f32 %v486_v6, %v458_v59  ;;  %vm455_vm4 = vcmp.lt.f32.partialorder %v453_v63, 0.0  ;;  %vm641_vm14 = vmand %vm639_vm8, %vm640_vm9 }
 0x1be   : > { %v457_v44 = vsel %vm455_vm4, -1.0, %v1119_v39  ;;  %vm654_vm0 = vmand %vm652_vm11, %vm653_vm12 }
 0x1bf   : > { %980 = vrcp.f32 %v462_v0  ;;  %v461_v4 = vmul.f32 0.3275911, %v459_v1  ;;  %v487_v8 = vsub.f32 0.0, %v459_v1  ;;  %v490_v11 = vmul.f32 1.442695, %v488_v7 }
 0x1c1   : > { %v463_v5 = vadd.f32 1.0, %v461_v4  ;;  %v489_v12 = vmul.f32 %v487_v8, %v459_v1 }
 0x1c3   : > { %982 = vrcp.f32 %v463_v5  ;;  %v492_v17 = vmul.f32 1.442695, %v489_v12 }
 0x1c4   : > { %984 = vpow2.f32 %v490_v11 }
 0x1c5   : > { %986 = vpow2.f32 %v492_v17 }
 0x1cc   : > { %v981_v9 = vpop.eup %980 }
 0x1cd   : > { %v468_v10 = vmul.f32 1.0614054, %v981_v9 }
 0x1cf   : > { %v470_v13 = vadd.f32 -1.4531521, %v468_v10 }
 0x1d0   : > { %v983_v14 = vpop.eup %982 }
 0x1d1   : > { %v472_v15 = vmul.f32 %v981_v9, %v470_v13  ;;  %v469_v16 = vmul.f32 1.0614054, %v983_v14  ;;  %v985_v33 = vpop.eup %984 }
 0x1d2   : > { %v987_v38 = vpop.eup %986 }
 0x1d3   : > { %v474_v18 = vadd.f32 1.4214138, %v472_v15  ;;  %v471_v19 = vadd.f32 -1.4531521, %v469_v16 }
 0x1d5   : > { %v476_v20 = vmul.f32 %v981_v9, %v474_v18  ;;  %v473_v21 = vmul.f32 %v983_v14, %v471_v19 }
 0x1d7   : > { %v478_v22 = vadd.f32 -0.28449672, %v476_v20  ;;  %v475_v23 = vadd.f32 1.4214138, %v473_v21 }
 0x1d9   : > { %v480_v24 = vmul.f32 %v981_v9, %v478_v22  ;;  %v477_v25 = vmul.f32 %v983_v14, %v475_v23 }
 0x1db   : > { %v482_v26 = vadd.f32 0.2548296, %v480_v24  ;;  %v479_v29 = vadd.f32 -0.28449672, %v477_v25 }
 0x1dd   : > { %v484_v31 = vmul.f32 %v981_v9, %v482_v26  ;;  %v481_v32 = vmul.f32 %v983_v14, %v479_v29 }
 0x1df   : > { %v494_v34 = vmul.f32 %v985_v33, %v484_v31  ;;  %v483_v35 = vadd.f32 0.2548296, %v481_v32 }
 0x1e1   : > { %v496_v36 = vsub.f32 1.0, %v494_v34  ;;  %v485_v37 = vmul.f32 %v983_v14, %v483_v35 }
 0x1e3   : > { %v498_v41 = vmul.f32 %v496_v36, %v456_v40  ;;  %v495_v42 = vmul.f32 %v987_v38, %v485_v37 }
 0x1e5   : > { %v497_v43 = vsub.f32 1.0, %v495_v42  ;;  %v500_v45 = vadd.f32 1.0, %v498_v41 }
 0x1e7   : > { %v499_v46 = vmul.f32 %v497_v43, %v457_v44  ;;  %v502_v50 = vmul.f32 %v500_v45, %v450_v47 }
 0x1e9   : > { %v501_v49 = vadd.f32 1.0, %v499_v46 }
 0x1eb   : > { %v503_v51 = vmul.f32 %v501_v49, %v451_v48 }
 0x1ed   : > { %v504_v52 = vpack.c.bf16 %v503_v51, %v502_v50 }
 0x1ef   : > { %878 = vmatmul.mubr.bf16.vlgmr.msra.gmra.mxu1 %v504_v52 }
 0x2af   : > { %v607_v57 = vpop.f32.mrf.mxu1 }
 0x2b0   : > { %v608_v58 = vadd.f32 %v607_v57, %v524_v54 }
 0x2b1   : > { %v879_v59 = vpop.f32.mrf.mxu1 }
 0x2b2   : > { %v619_v55 = vrot.slane %v608_v58, 1  ;;  %v632_v30 = vrot.slane %v608_v58, 2  ;;  %v645_v1 = vrot.slane %v608_v58, 4 }
 0x2b3   : > { %v610_v61 = vpop.f32.mrf.mxu1 }
 0x2b4   : > { %v611_v62 = vadd.f32 %v610_v61, %v524_v54 }
 0x2b5   : > { %v880_v28 = vpop.f32.mrf.mxu1 }
 0x2b6   : > { %v620_v60 = vrot.slane %v611_v62, 1  ;;  %v633_v63 = vrot.slane %v611_v62, 2  ;;  %v646_v0 = vrot.slane %v611_v62, 4 }
 0x2b8   : > { %v621_v4 = vsel %vm618_vm7, %v619_v55, %v620_v60  ;;  %v625_v5 = vsel %vm618_vm7, %v620_v60, %v619_v55  ;;  %v634_v6 = vsel %vm631_vm10, %v632_v30, %v633_v63  ;;  %v638_v7 = vsel %vm631_vm10, %v633_v63, %v632_v30 }
 0x2b9   : > { %v629_v8 = vsel %vm1348_vm13, %v621_v4, %v608_v58  ;;  %v630_v9 = vsel %vm1348_vm13, %v625_v5, %v611_v62  ;;  %v647_v12 = vsel %vm644_vm15, %v645_v1, %v646_v0  ;;  %v651_v13 = vsel %vm644_vm15, %v646_v0, %v645_v1 }
 0x2ba   : > { %v642_v10 = vsel %vm641_vm14, %v634_v6, %v629_v8  ;;  %v643_v11 = vsel %vm641_vm14, %v638_v7, %v630_v9 }
 0x2bb   : > { %v655_v14 = vsel %vm654_vm0, %v647_v12, %v642_v10  ;;  %v656_v15 = vsel %vm654_vm0, %v651_v13, %v643_v11 }
 0x2bc   : > { %v658_v16 = vadd.f32 %v656_v15, %v1293_v3  ;;  %v657_v17 = vadd.f32 %v655_v14, %v1290_v2 }
 0x2be   : > { %660 = vst.msk [vmem:[%s1284_s19 + $0x8] sm:$0xff] %vm339_vm1, %v658_v16  ;;  %659 = vst.msk [vmem:[%s1284_s19] sm:$0xff] %vm339_vm1, %v657_v17 }
 0x2bf   : > { %1029 = shalt.err (!%p1026_p12)
}
 0x2c0   : > { %s1030_s19 = scalar_lea.hbm %s1364_s14, 256  ;;  %s1034_s15 = scalar_lea.hbm %s1430_s5, 512 }
 0x2c1   : > { %p1031_p3 = scmp.ne.s32.totalorder %s1364_s14, %s1030_s19  ;;  %p1035_p0 = scmp.lt.s32.totalorder %s1364_s14, %s1430_s5 }
 0x2c2   : > { %p1036_p9 = scmp.lt.s32.totalorder %s1034_s15, %s1030_s19 }
 0x2c3   : > { %p1032_p13 = pnand %p1031_p3, %p1216_p10 }
 0x2c4   : > { %p1037_p1 = por %p1036_p9, %p1035_p0 }
 0x2c5   : > { %p1033_p2 = pneg %p1032_p13 }
 0x2c7   : > { %p1038_p4 = pnand %p1037_p1, %p1033_p2 }
 0x2c9   : > { %1041 = shalt.err (!%p1038_p4)
}
 0x2ca   : > { %s1121_s7 = smov 128   ;;  %s1122_s11 = smov 8  }
 0x2cb   : > { %883 = dma.vmem_to_hbm [thread:$0]  (%p1216_p10), %s1366_s20, 256, %s1364_s14, %s662_s22, %s1121_s7, %s1121_s7, %s1122_s11  }
 0x2cc PF: > { %p894_p5 = scmp.ge.s32.totalorder %s1112_s25, 2  ;;  %s690_s16 = sand.u32 1, %s1084_s18  }
 0x2cd   : > { %s691_s21 = scalar_lea.sflag [#allocation4], %s690_s16 }
 0x2ce   : > { %p890_p6 = pnand %p894_p5, %p1222_p11 }
 0x2d0   : > { %p891_p7 = pneg %p890_p6 }
 0x2d2   : > { %1079 = dma.done.wait (%p891_p7), %s691_s21, 256  }
 0x2d3   : > { %1081 = vsyncadd (%p891_p7), %s691_s21, 4294967040  ;;  %s21_s25 = sadd.s32 1, %s1112_s25   ;;  %s1452_s18 = sld [smem:[#allocation8_spill]] }
 0x2d4   : > { %p18_p8 = scmp.ge.s32.totalorder %s21_s25, 18   ;;  %s1453_s19 = sld [smem:[#allocation9_spill]] }
 0x2d5   : > { %s1454_s20 = sld [smem:[#allocation14_spill]] }
 0x2d6   : > { %s1455_s21 = sld [smem:[#allocation10_spill]]  ;;  %20 = sbr.rel (!%p18_p8) target bundleno = 9 (0x9), region = 101 }
 0x2d7   : > { %s1456_s22 = sld [smem:[#allocation11_spill]] }
 0x2d8   : > { %s1457_s23 = sld [smem:[#allocation12_spill]] }
 0x2d9   : > { %s1458_s24 = sld [smem:[#allocation13_spill]] }
 0x2db   :  { %696 = vsyncpa [#allocation3], 1 }
 0x2dc   :  { %698 = vsyncpa [#allocation3 + $0x1], 1 }
 0x2dd   :  { %699 = vsyncpa [#allocation4], 1 }
 0x2de   :  { %701 = vsyncpa [#allocation4 + $0x1], 1 }

</bundles_post_ra>
